<compile_context>
chip_gen: v5e
topology: v5e:2x2
jax: 0.10.0
libtpu: 0.0.40
codegen_flags: <defaults>
</compile_context>

<pallas_src>
import functools

import jax
import jax.numpy as jnp
import numpy as np
from jax import lax
from jax.experimental import pallas as pl
from jax.experimental.pallas import tpu as pltpu


def label_to_id(i):
    # TODO(synk): original `label_to_id` is external/undefined; identity mapping used here.
    return int(i)


def _tpu_config():
    """(physical VMEM bytes per core, TensorCores per chip) with safe fallbacks."""
    phys_vmem = None
    try:
        phys_vmem = int(pltpu.get_tpu_info().vmem_capacity_bytes)
    except Exception:
        phys_vmem = None
    kind = ""
    try:
        kind = (jax.devices()[0].device_kind or "").lower()
    except Exception:
        pass
    is_v7 = "v7" in kind
    if phys_vmem is None:
        phys_vmem = 64 * 1024 * 1024 if is_v7 else 128 * 1024 * 1024
    num_tc = 2 if is_v7 else 1
    return phys_vmem, num_tc


def _pack_scalars(vals, n_acc):
    """Pack a static list of traced scalars into a (1, 1, n_acc) f32 vector."""
    # NOTE: minor VPU cost only (n_acc ~ 10 selects per step); negligible once
    # tiles are multi-MiB. The iota is emitted once per kernel body.
    pos = lax.broadcasted_iota(jnp.int32, (1, 1, n_acc), 2)
    vec = jnp.zeros((1, 1, n_acc), jnp.float32)
    for k, v in enumerate(vals):
        vec = jnp.where(pos == k, v, vec)
    return vec


def _ce_bce_lane_major_kernel(xt_ref, labels_ref, w_ref, out_ref, *, pairs, n_acc):
    """Small-C path: logits streamed as (C, T) so the batch dim fills the lanes.

    Accumulates [wnll_sum, w_sum, cnt_0..cnt_{D-1}, sq_0..sq_{D-1}] per partial.
    """
    step = pl.program_id(1)

    @pl.when(step == 0)
    def _init():
        out_ref[...] = jnp.zeros_like(out_ref)

    x = xt_ref[...].astype(jnp.float32)         # (C, T) logits, f32 cast per tile
    labels = labels_ref[...]                    # (1, T) int32, -1 == padding
    w = w_ref[...].astype(jnp.float32)          # (C, 1) class weights
    c, t = x.shape

    # numerically stable softmax pieces; class axis = sublanes -> cheap for small C
    m = jnp.max(x, axis=0, keepdims=True)       # (1, T)
    e = jnp.exp(x - m)                          # (C, T)
    s = jnp.sum(e, axis=0, keepdims=True)       # (1, T)
    recip_s = 1.0 / s                           # exact (keeps 1e-5 tolerance)

    row = lax.broadcasted_iota(jnp.int32, (c, t), 0)
    onehot = (labels == row).astype(jnp.float32)             # (C, T); zero for padding

    x_label = jnp.sum(onehot * x, axis=0, keepdims=True)     # (1, T)
    w_label = jnp.sum(onehot * w, axis=0, keepdims=True)     # (1, T); 0 for padded rows
    nll = m + jnp.log(s) - x_label                            # (1, T)

    cnts, sqs = [], []
    for a, b in pairs:                                        # static -> unrolled
        for (l1, l2) in ((a, b), (b, a)):
            mask = (labels == l1).astype(jnp.float32)         # (1, T)
            prob = e[l2:l2 + 1, :] * recip_s                  # (1, T) only needed row
            cnts.append(jnp.sum(mask))
            sqs.append(jnp.sum(mask * prob * prob))

    vals = [jnp.sum(w_label * nll), jnp.sum(w_label)] + cnts + sqs
    out_ref[...] += _pack_scalars(vals, n_acc)


def _ce_bce_row_major_kernel(x_ref, labels_ref, w_ref, out_ref, *, pairs, n_acc):
    """Large-C fallback: logits streamed as (T, C) blocks (classes on lanes)."""
    step = pl.program_id(1)

    @pl.when(step == 0)
    def _init():
        out_ref[...] = jnp.zeros_like(out_ref)

    x = x_ref[...].astype(jnp.float32)          # (T, C)
    labels = labels_ref[...]                    # (T, 1) int32, -1 == padding
    w = w_ref[...].astype(jnp.float32)          # (1, C)
    t, c = x.shape

    m = jnp.max(x, axis=1, keepdims=True)       # (T, 1)
    e = jnp.exp(x - m)                          # (T, C)
    s = jnp.sum(e, axis=1, keepdims=True)       # (T, 1)
    recip_s = 1.0 / s

    col = lax.broadcasted_iota(jnp.int32, (t, c), 1)
    onehot = (labels == col).astype(jnp.float32)

    x_label = jnp.sum(onehot * x, axis=1, keepdims=True)
    w_label = jnp.sum(onehot * w, axis=1, keepdims=True)
    nll = m + jnp.log(s) - x_label

    cnts, sqs = [], []
    for a, b in pairs:
        for (l1, l2) in ((a, b), (b, a)):
            mask = (labels == l1).astype(jnp.float32)
            prob = e[:, l2:l2 + 1] * recip_s
            cnts.append(jnp.sum(mask))
            sqs.append(jnp.sum(mask * prob * prob))

    vals = [jnp.sum(w_label * nll), jnp.sum(w_label)] + cnts + sqs
    out_ref[...] += _pack_scalars(vals, n_acc)


def ce_bce_loss(outputs, labels, weight, pairs, bce_weight=0.5,
                tile_n=None, num_partials=None):
    """outputs: [N, C] logits (any float dtype), labels: [N] int, weight: [C]."""
    N, C = outputs.shape
    pair_ids = tuple((label_to_id(a), label_to_id(b)) for a, b in pairs)
    n_dirs = 2 * len(pair_ids)
    n_acc = 2 + 2 * n_dirs

    itemsize = jnp.dtype(outputs.dtype).itemsize
    phys_vmem, num_tc = _tpu_config()
    # 48 MiB scoped VMEM on 64-MiB chips (v7x), 64 MiB on 128-MiB chips (v5e/v6e).
    vmem_limit = 48 * 1024 * 1024 if phys_vmem <= 64 * 1024 * 1024 else 64 * 1024 * 1024
    if num_partials is None:
        num_partials = num_tc        # 2-way split only where a second TC exists
    num_partials = max(1, int(num_partials))

    small_c = C <= 64                # lane-major-N layout when classes are few
    align = 128 if small_c else 8

    if tile_n is None:
        # Size each step by HBM traffic (~4 MiB of logits) and cap by the f32
        # working set (~5 C*T-sized temporaries) so double-buffered inputs plus
        # temporaries fit the per-generation scoped-VMEM budget.
        target_dma_bytes = 4 * 1024 * 1024
        f32_budget = max(8 * 1024 * 1024, (vmem_limit - 8 * 1024 * 1024) // 2)
        max_elems = min(target_dma_bytes // itemsize, f32_budget // (4 * 5))
        tile_n = max(align, max_elems // max(C, 1))
    tile_n = max(align, (int(tile_n) // align) * align)
    tile_n = min(tile_n, max(align, ((N + align - 1) // align) * align))

    steps_total = (N + tile_n - 1) // tile_n
    steps_per_core = (steps_total + num_partials - 1) // num_partials
    n_pad = num_partials * steps_per_core * tile_n
    pad = n_pad - N

    # padding: zero logits + label -1 -> contributes 0 to every accumulator
    labels_flat = jnp.pad(labels.reshape(N).astype(jnp.int32), (0, pad),
                          constant_values=-1)
    w_f32 = jnp.asarray(weight, jnp.float32)

    cost = pl.CostEstimate(
        flops=int(10 * N * C),
        transcendentals=int(N * C),
        bytes_accessed=int(N * C * itemsize + N * 4 + C * 4),
    )
    cparams = pltpu.CompilerParams(
        dimension_semantics=("parallel", "arbitrary"),
        vmem_limit_bytes=vmem_limit,
    )

    if small_c:
        logits_in = jnp.pad(outputs.T, ((0, 0), (0, pad)))          # (C, n_pad), orig dtype
        labels_in = labels_flat.reshape(1, n_pad)                   # lane-dense labels
        w_in = w_f32.reshape(C, 1)
        kernel = functools.partial(_ce_bce_lane_major_kernel, pairs=pair_ids, n_acc=n_acc)
        in_specs = [
            pl.BlockSpec((C, tile_n), lambda p, i: (0, p * steps_per_core + i)),
            pl.BlockSpec((1, tile_n), lambda p, i: (0, p * steps_per_core + i)),
            pl.BlockSpec((C, 1), lambda p, i: (0, 0)),
        ]
    else:
        logits_in = jnp.pad(outputs, ((0, pad), (0, 0)))             # (n_pad, C), orig dtype
        labels_in = labels_flat.reshape(n_pad, 1)
        w_in = w_f32.reshape(1, C)
        kernel = functools.partial(_ce_bce_row_major_kernel, pairs=pair_ids, n_acc=n_acc)
        in_specs = [
            pl.BlockSpec((tile_n, C), lambda p, i: (p * steps_per_core + i, 0)),
            pl.BlockSpec((tile_n, 1), lambda p, i: (p * steps_per_core + i, 0)),
            pl.BlockSpec((1, C), lambda p, i: (0, 0)),
        ]

    parts = pl.pallas_call(
        kernel,
        out_shape=jax.ShapeDtypeStruct((num_partials, 1, n_acc), jnp.float32),
        grid=(num_partials, steps_per_core),
        in_specs=in_specs,
        out_specs=pl.BlockSpec((1, 1, n_acc), lambda p, i: (p, 0, 0)),
        compiler_params=cparams,
        cost_estimate=cost,
    )(logits_in, labels_in, w_in)

    # tiny finalize on the partial sums (pure JAX)
    acc = jnp.sum(parts.reshape(num_partials, n_acc), axis=0)        # (n_acc,)
    total = acc[0] / acc[1]                                          # weighted-mean CE
    if n_dirs:
        cnt = acc[2:2 + n_dirs]
        sq = acc[2 + n_dirs:2 + 2 * n_dirs]
        terms = jnp.where(cnt > 0.0, sq / jnp.maximum(cnt, 1.0), 0.0)
        total = total + bce_weight * jnp.sum(terms)
    return total


def _reference(outputs, labels, weight, pairs, bce_weight=0.5):
    """Pure-JAX reference mirroring the PyTorch module."""
    x = outputs.astype(jnp.float32)
    log_sm = jax.nn.log_softmax(x, axis=1)
    sm = jax.nn.softmax(x, axis=1)
    nll = -jnp.take_along_axis(log_sm, labels[:, None], axis=1)[:, 0]
    w_i = weight[labels]
    total = jnp.sum(w_i * nll) / jnp.sum(w_i)
    for a, b in pairs:
        for (l1, l2) in ((a, b), (b, a)):
            mask = (labels == l1).astype(jnp.float32)
            prob = sm[:, l2]
            cnt = jnp.sum(mask)
            sq_sum = jnp.sum(mask * prob * prob)
            term = jnp.where(cnt > 0.0, sq_sum / jnp.maximum(cnt, 1.0), 0.0)
            total = total + bce_weight * term
    return total


if __name__ == "__main__":
    key = jax.random.PRNGKey(0)
    k1, k2, k3, k4 = jax.random.split(key, 4)

    # deterministic "module parameters": CE class weights and the confusion pairs
    weight = jnp.array([1.0, 2.0, 0.5, 1.5], dtype=jnp.float32)
    pairs = [(0, 1), (2, 3)]

    # small smoke test (single-step grid)
    N, C = 8, 4
    outputs = jax.random.normal(k1, (N, C), dtype=jnp.float32)
    labels = jax.random.randint(k2, (N,), 0, C, dtype=jnp.int32)
    loss = jax.block_until_ready(ce_bce_loss(outputs, labels, weight, pairs))
    ref = _reference(outputs, labels, weight, pairs)
    np.testing.assert_allclose(np.asarray(loss), np.asarray(ref), rtol=1e-5, atol=1e-5)

    # multi-step / multi-partial streaming path (still tiny data)
    N2 = 512
    outputs2 = jax.random.normal(k3, (N2, C), dtype=jnp.float32)
    labels2 = jax.random.randint(k4, (N2,), 0, C, dtype=jnp.int32)
    loss2 = jax.block_until_ready(
        ce_bce_loss(outputs2, labels2, weight, pairs, tile_n=128, num_partials=2))
    ref2 = _reference(outputs2, labels2, weight, pairs)
    np.testing.assert_allclose(np.asarray(loss2), np.asarray(ref2), rtol=1e-4, atol=1e-5)

    print("KERNEL_OK")
</pallas_src>

<mosaic_0001>
module attributes {stable_mosaic.version = 11 : i64} {
  func.func @_ce_bce_lane_major_kernel(%arg0: i32, %arg1: i32, %arg2: memref<4x128xf32, #tpu.memory_space<vmem>>, %arg3: memref<1x128xi32, #tpu.memory_space<vmem>>, %arg4: memref<4x1xf32, #tpu.memory_space<vmem>>, %arg5: memref<1x1x10xf32, #tpu.memory_space<vmem>>) attributes {dimension_semantics = [#tpu.dimension_semantics<parallel>, #tpu.dimension_semantics<arbitrary>], iteration_bounds = array<i64: 1, 1>, scalar_prefetch = 0 : i64, scratch_operands = 0 : i64, tpu.core_type = #tpu.core_type<tc>, window_params = [{transform_indices = @transform_0, window_bounds = array<i64: 4, 128>}, {transform_indices = @transform_1, window_bounds = array<i64: 1, 128>}, {pipeline_mode = #tpu.pipeline_mode<synchronous>, transform_indices = @transform_2, window_bounds = array<i64: 4, 1>}, {transform_indices = @transform_3, window_bounds = array<i64: 1, 1, 10>}]} {
    %c0_i32 = arith.constant 0 : i32
    %0 = arith.cmpi eq, %arg1, %c0_i32 : i32
    %1 = arith.extui %0 : i1 to i32
    %c0_i32_0 = arith.constant 0 : i32
    %2 = arith.cmpi ne, %1, %c0_i32_0 : i32
    scf.if %2 {
      %cst_32 = arith.constant 0.000000e+00 : f32
      %148 = vector.broadcast %cst_32 : f32 to vector<1x1x10xf32>
      %c0_33 = arith.constant 0 : index
      %c0_34 = arith.constant 0 : index
      %c0_35 = arith.constant 0 : index
      %149 = vector.load %arg5[%c0_33, %c0_34, %c0_35] : memref<1x1x10xf32, #tpu.memory_space<vmem>>, vector<1x1x10xf32>
      tpu.vector_store %arg5[%c0_33, %c0_34, %c0_35], %148 {strides = array<i32>} : memref<1x1x10xf32, #tpu.memory_space<vmem>>, vector<1x1x10xf32>,
    } else {
    }
    %c0 = arith.constant 0 : index
    %c0_1 = arith.constant 0 : index
    %3 = vector.load %arg2[%c0, %c0_1] : memref<4x128xf32, #tpu.memory_space<vmem>>, vector<4x128xf32>
    %c0_2 = arith.constant 0 : index
    %c0_3 = arith.constant 0 : index
    %4 = vector.load %arg3[%c0_2, %c0_3] : memref<1x128xi32, #tpu.memory_space<vmem>>, vector<1x128xi32>
    %c0_4 = arith.constant 0 : index
    %c0_5 = arith.constant 0 : index
    %5 = vector.load %arg4[%c0_4, %c0_5] : memref<4x1xf32, #tpu.memory_space<vmem>>, vector<4x1xf32>
    %cst = arith.constant dense<0xFF800000> : vector<128xf32>
    %6 = vector.multi_reduction <maximumf>, %3, %cst [0] : vector<4x128xf32> to vector<128xf32>
    %7 = vector.shape_cast %6 : vector<128xf32> to vector<1x128xf32>
    %8 = vector.broadcast %7 : vector<1x128xf32> to vector<4x128xf32>
    %9 = arith.subf %3, %8 : vector<4x128xf32>
    %10 = math.exp %9 : vector<4x128xf32>
    %cst_6 = arith.constant dense<0.000000e+00> : vector<128xf32>
    %11 = vector.multi_reduction <add>, %10, %cst_6 [0] : vector<4x128xf32> to vector<128xf32>
    %12 = vector.shape_cast %11 : vector<128xf32> to vector<1x128xf32>
    %cst_7 = arith.constant 1.000000e+00 : f32
    %13 = vector.broadcast %cst_7 : f32 to vector<1x128xf32>
    %14 = arith.divf %13, %12 : vector<1x128xf32>
    %15 = tpu.iota {dimensions = array<i32: 0>} : vector<4x128xi32>
    %16 = vector.broadcast %4 : vector<1x128xi32> to vector<4x128xi32>
    %17 = arith.cmpi eq, %16, %15 : vector<4x128xi32>
    %18 = arith.extui %17 : vector<4x128xi1> to vector<4x128xi32>
    %19 = arith.sitofp %18 : vector<4x128xi32> to vector<4x128xf32>
    %20 = arith.mulf %19, %3 : vector<4x128xf32>
    %cst_8 = arith.constant dense<0.000000e+00> : vector<128xf32>
    %21 = vector.multi_reduction <add>, %20, %cst_8 [0] : vector<4x128xf32> to vector<128xf32>
    %22 = vector.shape_cast %21 : vector<128xf32> to vector<1x128xf32>
    %23 = vector.broadcast %5 : vector<4x1xf32> to vector<4x128xf32>
    %24 = arith.mulf %19, %23 : vector<4x128xf32>
    %cst_9 = arith.constant dense<0.000000e+00> : vector<128xf32>
    %25 = vector.multi_reduction <add>, %24, %cst_9 [0] : vector<4x128xf32> to vector<128xf32>
    %26 = vector.shape_cast %25 : vector<128xf32> to vector<1x128xf32>
    %27 = math.log %12 : vector<1x128xf32>
    %28 = arith.addf %7, %27 : vector<1x128xf32>
    %29 = arith.subf %28, %22 : vector<1x128xf32>
    %c0_i32_10 = arith.constant 0 : i32
    %30 = vector.broadcast %c0_i32_10 : i32 to vector<1x128xi32>
    %31 = arith.cmpi eq, %4, %30 : vector<1x128xi32>
    %32 = arith.extui %31 : vector<1x128xi1> to vector<1x128xi32>
    %33 = arith.sitofp %32 : vector<1x128xi32> to vector<1x128xf32>
    %34 = vector.extract_strided_slice %10 {offsets = [1, 0], sizes = [1, 128], strides = [1, 1]} : vector<4x128xf32> to vector<1x128xf32>
    %35 = arith.mulf %34, %14 : vector<1x128xf32>
    %36 = vector.shape_cast %33 : vector<1x128xf32> to vector<1x1x128xf32>
    %cst_11 = arith.constant dense<0.000000e+00> : vector<1xf32>
    %37 = vector.multi_reduction <add>, %36, %cst_11 [1, 2] : vector<1x1x128xf32> to vector<1xf32>
    %38 = vector.shape_cast %37 : vector<1xf32> to vector<1x1x1xf32>
    %39 = vector.extract %38[0, 0, 0] : f32 from vector<1x1x1xf32>
    %40 = arith.mulf %33, %35 : vector<1x128xf32>
    %41 = arith.mulf %40, %35 : vector<1x128xf32>
    %42 = vector.shape_cast %41 : vector<1x128xf32> to vector<1x1x128xf32>
    %cst_12 = arith.constant dense<0.000000e+00> : vector<1xf32>
    %43 = vector.multi_reduction <add>, %42, %cst_12 [1, 2] : vector<1x1x128xf32> to vector<1xf32>
    %44 = vector.shape_cast %43 : vector<1xf32> to vector<1x1x1xf32>
    %45 = vector.extract %44[0, 0, 0] : f32 from vector<1x1x1xf32>
    %c1_i32 = arith.constant 1 : i32
    %46 = vector.broadcast %c1_i32 : i32 to vector<1x128xi32>
    %47 = arith.cmpi eq, %4, %46 : vector<1x128xi32>
    %48 = arith.extui %47 : vector<1x128xi1> to vector<1x128xi32>
    %49 = arith.sitofp %48 : vector<1x128xi32> to vector<1x128xf32>
    %50 = vector.extract_strided_slice %10 {offsets = [0, 0], sizes = [1, 128], strides = [1, 1]} : vector<4x128xf32> to vector<1x128xf32>
    %51 = arith.mulf %50, %14 : vector<1x128xf32>
    %52 = vector.shape_cast %49 : vector<1x128xf32> to vector<1x1x128xf32>
    %cst_13 = arith.constant dense<0.000000e+00> : vector<1xf32>
    %53 = vector.multi_reduction <add>, %52, %cst_13 [1, 2] : vector<1x1x128xf32> to vector<1xf32>
    %54 = vector.shape_cast %53 : vector<1xf32> to vector<1x1x1xf32>
    %55 = vector.extract %54[0, 0, 0] : f32 from vector<1x1x1xf32>
    %56 = arith.mulf %49, %51 : vector<1x128xf32>
    %57 = arith.mulf %56, %51 : vector<1x128xf32>
    %58 = vector.shape_cast %57 : vector<1x128xf32> to vector<1x1x128xf32>
    %cst_14 = arith.constant dense<0.000000e+00> : vector<1xf32>
    %59 = vector.multi_reduction <add>, %58, %cst_14 [1, 2] : vector<1x1x128xf32> to vector<1xf32>
    %60 = vector.shape_cast %59 : vector<1xf32> to vector<1x1x1xf32>
    %61 = vector.extract %60[0, 0, 0] : f32 from vector<1x1x1xf32>
    %c2_i32 = arith.constant 2 : i32
    %62 = vector.broadcast %c2_i32 : i32 to vector<1x128xi32>
    %63 = arith.cmpi eq, %4, %62 : vector<1x128xi32>
    %64 = arith.extui %63 : vector<1x128xi1> to vector<1x128xi32>
    %65 = arith.sitofp %64 : vector<1x128xi32> to vector<1x128xf32>
    %66 = vector.extract_strided_slice %10 {offsets = [3, 0], sizes = [1, 128], strides = [1, 1]} : vector<4x128xf32> to vector<1x128xf32>
    %67 = arith.mulf %66, %14 : vector<1x128xf32>
    %68 = vector.shape_cast %65 : vector<1x128xf32> to vector<1x1x128xf32>
    %cst_15 = arith.constant dense<0.000000e+00> : vector<1xf32>
    %69 = vector.multi_reduction <add>, %68, %cst_15 [1, 2] : vector<1x1x128xf32> to vector<1xf32>
    %70 = vector.shape_cast %69 : vector<1xf32> to vector<1x1x1xf32>
    %71 = vector.extract %70[0, 0, 0] : f32 from vector<1x1x1xf32>
    %72 = arith.mulf %65, %67 : vector<1x128xf32>
    %73 = arith.mulf %72, %67 : vector<1x128xf32>
    %74 = vector.shape_cast %73 : vector<1x128xf32> to vector<1x1x128xf32>
    %cst_16 = arith.constant dense<0.000000e+00> : vector<1xf32>
    %75 = vector.multi_reduction <add>, %74, %cst_16 [1, 2] : vector<1x1x128xf32> to vector<1xf32>
    %76 = vector.shape_cast %75 : vector<1xf32> to vector<1x1x1xf32>
    %77 = vector.extract %76[0, 0, 0] : f32 from vector<1x1x1xf32>
    %c3_i32 = arith.constant 3 : i32
    %78 = vector.broadcast %c3_i32 : i32 to vector<1x128xi32>
    %79 = arith.cmpi eq, %4, %78 : vector<1x128xi32>
    %80 = arith.extui %79 : vector<1x128xi1> to vector<1x128xi32>
    %81 = arith.sitofp %80 : vector<1x128xi32> to vector<1x128xf32>
    %82 = vector.extract_strided_slice %10 {offsets = [2, 0], sizes = [1, 128], strides = [1, 1]} : vector<4x128xf32> to vector<1x128xf32>
    %83 = arith.mulf %82, %14 : vector<1x128xf32>
    %84 = vector.shape_cast %81 : vector<1x128xf32> to vector<1x1x128xf32>
    %cst_17 = arith.constant dense<0.000000e+00> : vector<1xf32>
    %85 = vector.multi_reduction <add>, %84, %cst_17 [1, 2] : vector<1x1x128xf32> to vector<1xf32>
    %86 = vector.shape_cast %85 : vector<1xf32> to vector<1x1x1xf32>
    %87 = vector.extract %86[0, 0, 0] : f32 from vector<1x1x1xf32>
    %88 = arith.mulf %81, %83 : vector<1x128xf32>
    %89 = arith.mulf %88, %83 : vector<1x128xf32>
    %90 = vector.shape_cast %89 : vector<1x128xf32> to vector<1x1x128xf32>
    %cst_18 = arith.constant dense<0.000000e+00> : vector<1xf32>
    %91 = vector.multi_reduction <add>, %90, %cst_18 [1, 2] : vector<1x1x128xf32> to vector<1xf32>
    %92 = vector.shape_cast %91 : vector<1xf32> to vector<1x1x1xf32>
    %93 = vector.extract %92[0, 0, 0] : f32 from vector<1x1x1xf32>
    %94 = arith.mulf %26, %29 : vector<1x128xf32>
    %95 = vector.shape_cast %94 : vector<1x128xf32> to vector<1x1x128xf32>
    %cst_19 = arith.constant dense<0.000000e+00> : vector<1xf32>
    %96 = vector.multi_reduction <add>, %95, %cst_19 [1, 2] : vector<1x1x128xf32> to vector<1xf32>
    %97 = vector.shape_cast %96 : vector<1xf32> to vector<1x1x1xf32>
    %98 = vector.extract %97[0, 0, 0] : f32 from vector<1x1x1xf32>
    %99 = vector.shape_cast %26 : vector<1x128xf32> to vector<1x1x128xf32>
    %cst_20 = arith.constant dense<0.000000e+00> : vector<1xf32>
    %100 = vector.multi_reduction <add>, %99, %cst_20 [1, 2] : vector<1x1x128xf32> to vector<1xf32>
    %101 = vector.shape_cast %100 : vector<1xf32> to vector<1x1x1xf32>
    %102 = vector.extract %101[0, 0, 0] : f32 from vector<1x1x1xf32>
    %c0_21 = arith.constant 0 : index
    %c0_22 = arith.constant 0 : index
    %c0_23 = arith.constant 0 : index
    %103 = vector.load %arg5[%c0_21, %c0_22, %c0_23] : memref<1x1x10xf32, #tpu.memory_space<vmem>>, vector<1x1x10xf32>
    %104 = tpu.iota {dimensions = array<i32: 2>} : vector<1x1x10xi32>
    %cst_24 = arith.constant 0.000000e+00 : f32
    %105 = vector.broadcast %cst_24 : f32 to vector<1x1x10xf32>
    %c0_i32_25 = arith.constant 0 : i32
    %106 = vector.broadcast %c0_i32_25 : i32 to vector<1x1x10xi32>
    %107 = arith.cmpi eq, %104, %106 : vector<1x1x10xi32>
    %108 = vector.broadcast %98 : f32 to vector<1x1x10xf32>
    %109 = arith.select %107, %108, %105 : vector<1x1x10xi1>, vector<1x1x10xf32>
    %c1_i32_26 = arith.constant 1 : i32
    %110 = vector.broadcast %c1_i32_26 : i32 to vector<1x1x10xi32>
    %111 = arith.cmpi eq, %104, %110 : vector<1x1x10xi32>
    %112 = vector.broadcast %102 : f32 to vector<1x1x10xf32>
    %113 = arith.select %111, %112, %109 : vector<1x1x10xi1>, vector<1x1x10xf32>
    %c2_i32_27 = arith.constant 2 : i32
    %114 = vector.broadcast %c2_i32_27 : i32 to vector<1x1x10xi32>
    %115 = arith.cmpi eq, %104, %114 : vector<1x1x10xi32>
    %116 = vector.broadcast %39 : f32 to vector<1x1x10xf32>
    %117 = arith.select %115, %116, %113 : vector<1x1x10xi1>, vector<1x1x10xf32>
    %c3_i32_28 = arith.constant 3 : i32
    %118 = vector.broadcast %c3_i32_28 : i32 to vector<1x1x10xi32>
    %119 = arith.cmpi eq, %104, %118 : vector<1x1x10xi32>
    %120 = vector.broadcast %55 : f32 to vector<1x1x10xf32>
    %121 = arith.select %119, %120, %117 : vector<1x1x10xi1>, vector<1x1x10xf32>
    %c4_i32 = arith.constant 4 : i32
    %122 = vector.broadcast %c4_i32 : i32 to vector<1x1x10xi32>
    %123 = arith.cmpi eq, %104, %122 : vector<1x1x10xi32>
    %124 = vector.broadcast %71 : f32 to vector<1x1x10xf32>
    %125 = arith.select %123, %124, %121 : vector<1x1x10xi1>, vector<1x1x10xf32>
    %c5_i32 = arith.constant 5 : i32
    %126 = vector.broadcast %c5_i32 : i32 to vector<1x1x10xi32>
    %127 = arith.cmpi eq, %104, %126 : vector<1x1x10xi32>
    %128 = vector.broadcast %87 : f32 to vector<1x1x10xf32>
    %129 = arith.select %127, %128, %125 : vector<1x1x10xi1>, vector<1x1x10xf32>
    %c6_i32 = arith.constant 6 : i32
    %130 = vector.broadcast %c6_i32 : i32 to vector<1x1x10xi32>
    %131 = arith.cmpi eq, %104, %130 : vector<1x1x10xi32>
    %132 = vector.broadcast %45 : f32 to vector<1x1x10xf32>
    %133 = arith.select %131, %132, %129 : vector<1x1x10xi1>, vector<1x1x10xf32>
    %c7_i32 = arith.constant 7 : i32
    %134 = vector.broadcast %c7_i32 : i32 to vector<1x1x10xi32>
    %135 = arith.cmpi eq, %104, %134 : vector<1x1x10xi32>
    %136 = vector.broadcast %61 : f32 to vector<1x1x10xf32>
    %137 = arith.select %135, %136, %133 : vector<1x1x10xi1>, vector<1x1x10xf32>
    %c8_i32 = arith.constant 8 : i32
    %138 = vector.broadcast %c8_i32 : i32 to vector<1x1x10xi32>
    %139 = arith.cmpi eq, %104, %138 : vector<1x1x10xi32>
    %140 = vector.broadcast %77 : f32 to vector<1x1x10xf32>
    %141 = arith.select %139, %140, %137 : vector<1x1x10xi1>, vector<1x1x10xf32>
    %c9_i32 = arith.constant 9 : i32
    %142 = vector.broadcast %c9_i32 : i32 to vector<1x1x10xi32>
    %143 = arith.cmpi eq, %104, %142 : vector<1x1x10xi32>
    %144 = vector.broadcast %93 : f32 to vector<1x1x10xf32>
    %145 = arith.select %143, %144, %141 : vector<1x1x10xi1>, vector<1x1x10xf32>
    %146 = arith.addf %103, %145 : vector<1x1x10xf32>
    %c0_29 = arith.constant 0 : index
    %c0_30 = arith.constant 0 : index
    %c0_31 = arith.constant 0 : index
    %147 = vector.load %arg5[%c0_29, %c0_30, %c0_31] : memref<1x1x10xf32, #tpu.memory_space<vmem>>, vector<1x1x10xf32>
    tpu.vector_store %arg5[%c0_29, %c0_30, %c0_31], %146 {strides = array<i32>} : memref<1x1x10xf32, #tpu.memory_space<vmem>>, vector<1x1x10xf32>,
    return
  }
  func.func @transform_0(%arg0: i32, %arg1: i32) -> (i32, i32) {
    %c1_i32 = arith.constant 1 : i32
    %0 = arith.muli %arg0, %c1_i32 : i32
    %1 = arith.addi %0, %arg1 : i32
    %c0_i32 = arith.constant 0 : i32
    %c0_i32_0 = arith.constant 0 : i32
    return %c0_i32, %1 : i32, i32
  }
  func.func @transform_1(%arg0: i32, %arg1: i32) -> (i32, i32) {
    %c1_i32 = arith.constant 1 : i32
    %0 = arith.muli %arg0, %c1_i32 : i32
    %1 = arith.addi %0, %arg1 : i32
    %c0_i32 = arith.constant 0 : i32
    %c0_i32_0 = arith.constant 0 : i32
    return %c0_i32, %1 : i32, i32
  }
  func.func @transform_2(%arg0: i32, %arg1: i32) -> (i32, i32) {
    %c0_i32 = arith.constant 0 : i32
    %c0_i32_0 = arith.constant 0 : i32
    %c0_i32_1 = arith.constant 0 : i32
    return %c0_i32, %c0_i32_0 : i32, i32
  }
  func.func @transform_3(%arg0: i32, %arg1: i32) -> (i32, i32, i32) {
    %c0_i32 = arith.constant 0 : i32
    %c0_i32_0 = arith.constant 0 : i32
    %c0_i32_1 = arith.constant 0 : i32
    return %arg0, %c0_i32, %c0_i32_0 : i32, i32, i32
  }
}

</mosaic_0001>

<bundles_post_ra>
// kernel: tpu_custom_call.1
= control target key start
LH: loop header
LB: loop body
LE: loop exit
PB: predicated region body
PF: predicated region fallthrough
CT: control target
= control target key end

     0   :  { %v390_v2 = vmov 0   ;;  %vm55_vm0 = vcmask 1043456   ;;  %s481_s0 = inlined_call_operand.vmem [shape: f32[4,128], index: 0, kind: input, shape index: {}]   ;;  %s482_s1 = inlined_call_operand.vmem [shape: s32[1,128], index: 1, kind: input, shape index: {}]   ;;  %s483_s2 = inlined_call_operand.vmem [shape: f32[4,1], index: 2, kind: input, shape index: {}]   ;;  %s484_s3 = inlined_call_operand.hbm [shape: f32[1,1,10], index: 3, kind: output, shape index: {}]  }
   0x1   :  { %v54_v0 = vld [vmem:[%s483_s2] sm:$0xf]  ;;  %356 = vset.pattern.permute.xlu0 %v390_v2 }
   0x2   :  { %v419_v1 = vld [vmem:[%s481_s0] sm:$0xf] }
   0x3   :  { %8 = vsyncpa [#allocation3], 0  ;;  %104 = vperm.xlu0 %356, %v54_v0   ;;  %v56_v3 = vsel %vm55_vm0, %v419_v1, -inf  ;;  %v53_v20 = vld [vmem:[%s482_s1] sm:$0x1]  ;;  %vm123_vm1 = vcmask 1040384   ;;  %v88_v50 = vlaneseq }
   0x4   :  { %v57_v4 = vrot.slane %v56_v3, 4  ;;  %vm180_vm2 = vcmp.eq.s32.totalorder %v53_v20, 2  ;;  %v391_v21 = vmov 0.0   ;;  %vm155_vm5 = vcmp.eq.s32.totalorder %v53_v20, 1  ;;  %v357_v53 = vld [vmem:[%s482_s1] ss:$0 sm:$0xff] }
   0x5   :  { %v331_v22 = vsel %vm180_vm2, 1.0, %v391_v21  ;;  %v330_v31 = vsel %vm155_vm5, 1.0, %v391_v21  ;;  %vm213_vm8 = vcmp.eq.s32.totalorder %v53_v20, 3  ;;  %vm119_vm9 = vcmp.eq.s32.totalorder %v53_v20, 0  ;;  %s392_s27 = smov [#allocation2]   ;;  %s310_s4 = sshll.u32 %s484_s3, 4  ;;  %s311_s4 = int_to_ptr.hbm [resolvable:$true] %s310_s4 }
   0x6   :  { %v58_v5 = vmax.f32 %v56_v3, %v57_v4  ;;  %v183_v23 = vsel %vm123_vm1, %v331_v22, 0.0  ;;  %v158_v33 = vsel %vm123_vm1, %v330_v31, 0.0  ;;  %v332_v37 = vsel %vm213_vm8, 1.0, %v391_v21  ;;  %s308_s28 = sshll.u32 %s392_s27, 4  ;;  %s309_s28 = int_to_ptr.vmem [resolvable:$true] %s308_s28 }
   0x7   :  { %184 = vadd.xlane.f32.xlu2 %v183_v23  ;;  %159 = vadd.xlane.f32.xlu1 %v158_v33  ;;  %v216_v38 = vsel %vm123_vm1, %v332_v37, 0.0  ;;  %v329_v40 = vsel %vm119_vm9, 1.0, %v391_v21  ;;  %v89_v52 = vshrl.u32 %v88_v50, 7  ;;  %vm50_vm11 = vcmask 73728  }
   0x8   :  { %v59_v6 = vrot.slane %v58_v5, 2  ;;  %v124_v42 = vsel %vm123_vm1, %v329_v40, 0.0  ;;  %51 = vst.msk [vmem:[#allocation2] sm:$0x1] %vm50_vm11, %v391_v21 }
   0x9   :  { %vm91_vm10 = vcmp.eq.s32.totalorder %v357_v53, %v89_v52 }
   0xa   :  { %v60_v7 = vmax.f32 %v58_v5, %v59_v6  ;;  %v328_v57 = vsel %vm91_vm10, 1.0, %v391_v21 }
   0xb   :  { %v94_v59 = vmul.f32 %v328_v57, %v419_v1 }
   0xc   :  { %v61_v8 = vrot.slane %v60_v7, 1 }
   0xd   :  { %v95_v60 = vsel %vm55_vm0, %v94_v59, 0.0 }
   0xe   :  { %v423_v9 = vmax.f32 %v60_v7, %v61_v8  ;;  %v96_v62 = vrot.slane %v95_v60, 4 }
   0xf   :  { %217 = vadd.xlane.f32.xlu2 %v216_v38 }
  0x10   :  { %v63_v10 = vsub.f32 %v419_v1, %v423_v9  ;;  %v97_v2 = vadd.f32 %v96_v62, %v95_v60 }
  0x12   :  { %v64_v11 = vmul.f32 1.442695, %v63_v10  ;;  %v98_v4 = vrot.slane %v97_v2, 2 }
  0x14   :  { %358 = vpow2.f32 %v64_v11  ;;  %v99_v6 = vadd.f32 %v98_v4, %v97_v2 }
  0x16   :  { %v100_v11 = vrot.slane %v99_v6, 1 }
  0x1a   :  { %v359_v12 = vpop.eup %358 }
  0x1b   :  { %v66_v13 = vsel %vm55_vm0, %v359_v12, 0.0 }
  0x1c   :  { %v67_v14 = vrot.slane %v66_v13, 4 }
  0x1e   :  { %v68_v15 = vadd.f32 %v67_v14, %v66_v13 }
  0x20   :  { %v69_v16 = vrot.slane %v68_v15, 2 }
  0x22   :  { %v70_v17 = vadd.f32 %v69_v16, %v68_v15  ;;  %v101_v15 = vadd.f32 %v100_v11, %v99_v6 }
  0x24   :  { %v71_v18 = vrot.slane %v70_v17, 1 }
  0x26   :  { %v428_v19 = vadd.f32 %v71_v18, %v70_v17 }
  0x28   :  { %360 = vrcp.f32 %v428_v19  ;;  %v84_v26 = vand.u32 2147483648, %v428_v19  ;;  %vm78_vm3 = vweird.f32 %v428_v19  ;;  %v82_v28 = vand.u32 2147483647, %v428_v19 }
  0x29   :  { %362 = vlog2.f32 %v428_v19 }
  0x2a   :  { %v85_v30 = vor.u32 1.1754944e-38, %v84_v26  ;;  %vm83_vm7 = vcmp.eq.f32.partialorder %v82_v28, 8.507059e+37 }
  0x2d   :  { %125 = vadd.xlane.f32.xlu0 %v124_v42 }
  0x2e   :  { %v361_v24 = vpop.eup %360 }
  0x2f   :  { %v74_v25 = vmul.f32 %v361_v24, %v428_v19  ;;  %vm79_vm4 = vweird.f32 %v361_v24  ;;  %v363_v7 = vpop.eup %362 }
  0x30   :  { %vm80_vm6 = vmor %vm78_vm3, %vm79_vm4 }
  0x31   :  { %v75_v27 = vsub.f32 1.0, %v74_v25 }
  0x33   :  { %v76_v29 = vmul.f32 %v361_v24, %v75_v27 }
  0x35   :  { %v77_v32 = vadd.f32 %v361_v24, %v76_v29 }
  0x37   :  { %v81_v34 = vsel %vm80_vm6, %v361_v24, %v77_v32 }
  0x38   :  { %v86_v35 = vsel %vm83_vm7, %v85_v30, %v81_v34 }
  0x39   :  { %v122_v36 = vmul.f32 %v359_v12, %v86_v35  ;;  %v116_v12 = vmul.f32 0.6931472, %v363_v7 }
  0x3b   :  { %135 = vst [vmem:[#allocation1] sm:$0xff] %v122_v36  ;;  %v168_v39 = vmul.f32 %v330_v31, %v122_v36  ;;  %v117_v16 = vadd.f32 %v116_v12, %v423_v9 }
  0x3d   :  { %v169_v43 = vmul.f32 %v168_v39, %v122_v36  ;;  %v118_v20 = vsub.f32 %v117_v16, %v101_v15 }
  0x3f   :  { %v170_v44 = vsel %vm123_vm1, %v169_v43, 0.0 }
  0x40   :  { %171 = vadd.xlane.f32.xlu2 %v170_v44 }
  0x42   :  { %v137_v41 = vld [vmem:[#allocation1 + $0x1] ss:$9 sm:$0xff] }
  0x43   :  { %140 = vst [vmem:[#allocation1] sm:$0xff] %v122_v36  ;;  %v139_v45 = vmul.f32 %v329_v40, %v137_v41 }
  0x4a   :  { %v142_v46 = vld [vmem:[#allocation1 + $0x1] ss:$9 sm:$0xff] }
  0x4b   :  { %193 = vst [vmem:[#allocation1] sm:$0xff] %v122_v36  ;;  %v144_v47 = vmul.f32 %v142_v46, %v139_v45 }
  0x4d   :  { %v145_v48 = vsel %vm123_vm1, %v144_v47, 0.0 }
  0x4e   :  { %146 = vadd.xlane.f32.xlu1 %v145_v48 }
  0x52   :  { %v195_v49 = vld [vmem:[#allocation1 + $0x3] ss:$9 sm:$0xff] }
  0x53   :  { %198 = vst [vmem:[#allocation1] sm:$0xff] %v122_v36  ;;  %v197_v51 = vmul.f32 %v331_v22, %v195_v49 }
  0x5a   :  { %v200_v54 = vld [vmem:[#allocation1 + $0x3] ss:$9 sm:$0xff] }
  0x5b   :  { %226 = vst [vmem:[#allocation1] sm:$0xff] %v122_v36  ;;  %v202_v55 = vmul.f32 %v200_v54, %v197_v51 }
  0x5d   :  { %v203_v56 = vsel %vm123_vm1, %v202_v55, 0.0 }
  0x5e   :  { %204 = vadd.xlane.f32.xlu1 %v203_v56 }
  0x62   :  { %v228_v58 = vld [vmem:[#allocation1 + $0x2] ss:$9 sm:$0xff] }
  0x63   :  { %231 = vst [vmem:[#allocation1] sm:$0xff] %v122_v36  ;;  %v230_v61 = vmul.f32 %v332_v37, %v228_v58 }
  0x6a   :  { %v233_v63 = vld [vmem:[#allocation1 + $0x2] ss:$9 sm:$0xff] }
  0x6b   :  { %v235_v0 = vmul.f32 %v233_v63, %v230_v61 }
  0x6d   :  { %v236_v3 = vsel %vm123_vm1, %v235_v0, 0.0 }
  0x6e   :  { %237 = vadd.xlane.f32.xlu1 %v236_v3 }
  0x75   :  { %v105_v5 = vpop.permute.xlu0 %104 }
  0x76   :  { %v107_v8 = vmul.f32 %v328_v57, %v105_v5 }
  0x78   :  { %v108_v1 = vsel %vm55_vm0, %v107_v8, 0.0 }
  0x79   :  { %v109_v10 = vrot.slane %v108_v1, 4 }
  0x7a   :  { %v185_v25 = vpop.xlane.xlu2 %184  ;;  %v160_v27 = vpop.xlane.xlu1 %159 }
  0x7b   :  { %v110_v13 = vadd.f32 %v109_v10, %v108_v1  ;;  %v161_v29 = vrot.slane %v160_v27, 4  ;;  %v186_v31 = vrot.slane %v185_v25, 4 }
  0x7d   :  { %v111_v14 = vrot.slane %v110_v13, 2  ;;  %v162_v34 = vadd.f32 %v161_v29, %v160_v27  ;;  %v187_v37 = vadd.f32 %v186_v31, %v185_v25 }
  0x7f   :  { %v112_v17 = vadd.f32 %v111_v14, %v110_v13  ;;  %v163_v39 = vrot.slane %v162_v34, 2  ;;  %v188_v42 = vrot.slane %v187_v37, 2 }
  0x81   :  { %v113_v18 = vrot.slane %v112_v17, 1  ;;  %v164_v46 = vadd.f32 %v163_v39, %v162_v34  ;;  %v189_v49 = vadd.f32 %v188_v42, %v187_v37 }
  0x82   :  { %v218_v26 = vpop.xlane.xlu2 %217 }
  0x83   :  { %v114_v22 = vadd.f32 %v113_v18, %v112_v17  ;;  %v219_v52 = vrot.slane %v218_v26, 4  ;;  %v165_v53 = vrot.slane %v164_v46, 1  ;;  %v190_v56 = vrot.slane %v189_v49, 1 }
  0x85   :  { %v257_v19 = vsel %vm123_vm1, %v114_v22, 0.0  ;;  %v246_v23 = vmul.f32 %v118_v20, %v114_v22  ;;  %v220_v58 = vadd.f32 %v219_v52, %v218_v26  ;;  %v166_v59 = vadd.f32 %v165_v53, %v164_v46 }
  0x86   :  { %258 = vadd.xlane.f32.xlu1 %v257_v19  ;;  %v191_v62 = vadd.f32 %v190_v56, %v189_v49 }
  0x87   :  { %v247_v24 = vsel %vm123_vm1, %v246_v23, 0.0  ;;  %v221_v63 = vrot.slane %v220_v58, 2 }
  0x88   :  { %248 = vadd.xlane.f32.xlu2 %v247_v24 }
  0x89   :  { %v222_v3 = vadd.f32 %v221_v63, %v220_v58 }
  0x8b   :  { %v223_v6 = vrot.slane %v222_v3, 1 }
  0x8d   :  { %v224_v1 = vadd.f32 %v223_v6, %v222_v3 }
  0xa0   :  { %v126_v28 = vpop.xlane.xlu0 %125 }
  0xa1   :  { %v127_v30 = vrot.slane %v126_v28, 4 }
  0xa3   :  { %v128_v32 = vadd.f32 %v127_v30, %v126_v28 }
  0xa5   :  { %v129_v35 = vrot.slane %v128_v32, 2 }
  0xa7   :  { %v130_v38 = vadd.f32 %v129_v35, %v128_v32 }
  0xa9   :  { %v131_v40 = vrot.slane %v130_v38, 1 }
  0xab   :  { %v132_v44 = vadd.f32 %v131_v40, %v130_v38 }
  0xad   :  { %333 = vpush %v132_v44 }
  0xb3   :  { %v172_v9 = vpop.xlane.xlu2 %171 }
  0xb4   :  { %v173_v33 = vrot.slane %v172_v9, 4 }
  0xb6   :  { %v174_v36 = vadd.f32 %v173_v33, %v172_v9  ;;  %v269_v9 = vand.u32 127, %v88_v50 }
  0xb8   :  { %v175_v41 = vrot.slane %v174_v36, 2  ;;  %vm270_vm12 = vcmp.eq.s32.totalorder %v269_v9, 0  ;;  %vm273_vm13 = vcmp.eq.s32.totalorder %v269_v9, 1  ;;  %vm276_vm14 = vcmp.eq.s32.totalorder %v269_v9, 2 }
  0xb9   :  { %vm279_vm15 = vcmp.eq.s32.totalorder %v269_v9, 3  ;;  %vm282_vm0 = vcmp.eq.s32.totalorder %v269_v9, 4  ;;  %vm285_vm1 = vcmp.eq.s32.totalorder %v269_v9, 5  ;;  %vm288_vm2 = vcmp.eq.s32.totalorder %v269_v9, 6 }
  0xba   :  { %v176_v48 = vadd.f32 %v175_v41, %v174_v36  ;;  %vm291_vm3 = vcmp.eq.s32.totalorder %v269_v9, 7  ;;  %vm294_vm4 = vcmp.eq.s32.totalorder %v269_v9, 8  ;;  %vm297_vm5 = vcmp.eq.s32.totalorder %v269_v9, 9 }
  0xbc   :  { %v177_v55 = vrot.slane %v176_v48, 1 }
  0xbe   :  { %v178_v61 = vadd.f32 %v177_v55, %v176_v48 }
  0xc1   :  { %v147_v43 = vpop.xlane.xlu1 %146 }
  0xc2   :  { %v148_v45 = vrot.slane %v147_v43, 4 }
  0xc4   :  { %v149_v47 = vadd.f32 %v148_v45, %v147_v43 }
  0xc6   :  { %v150_v51 = vrot.slane %v149_v47, 2 }
  0xc8   :  { %v151_v54 = vadd.f32 %v150_v51, %v149_v47  ;;  %v267_v47 = vld [vmem:[#allocation2] sm:$0x1] }
  0xca   :  { %v152_v57 = vrot.slane %v151_v54, 1 }
  0xcc   :  { %v153_v60 = vadd.f32 %v152_v57, %v151_v54 }
  0xce   :  { %335 = vpush %v153_v60 }
  0xcf   :  { %337 = vpush %v166_v59 }
  0xd0   :  { %339 = vpush %v178_v61 }
  0xd1   :  { %v205_v0 = vpop.xlane.xlu1 %204  ;;  %341 = vpush %v191_v62 }
  0xd2   :  { %v206_v2 = vrot.slane %v205_v0, 4 }
  0xd4   :  { %v207_v4 = vadd.f32 %v206_v2, %v205_v0 }
  0xd6   :  { %v208_v5 = vrot.slane %v207_v4, 2 }
  0xd8   :  { %v209_v7 = vadd.f32 %v208_v5, %v207_v4 }
  0xda   :  { %v210_v8 = vrot.slane %v209_v7, 1 }
  0xdc   :  { %v211_v10 = vadd.f32 %v210_v8, %v209_v7 }
  0xde   :  { %343 = vpush %v211_v10  ;;  %s334_s1 = spop %333 }
  0xdf   :  { %345 = vpush %v224_v1  ;;  %v277_v35 = vstv %s334_s1 }
  0xe1   :  { %v238_v11 = vpop.xlane.xlu1 %237 }
  0xe2   :  { %v239_v12 = vrot.slane %v238_v11, 4 }
  0xe4   :  { %v240_v13 = vadd.f32 %v239_v12, %v238_v11 }
  0xe6   :  { %v241_v14 = vrot.slane %v240_v13, 2 }
  0xe8   :  { %v242_v15 = vadd.f32 %v241_v14, %v240_v13 }
  0xea   :  { %v243_v16 = vrot.slane %v242_v15, 1 }
  0xec   :  { %v244_v17 = vadd.f32 %v243_v16, %v242_v15 }
  0xee   :  { %347 = vpush %v244_v17 }
  0xf9   :  { %v259_v18 = vpop.xlane.xlu1 %258 }
  0xfa   :  { %v260_v20 = vrot.slane %v259_v18, 4 }
  0xfb   :  { %v249_v22 = vpop.xlane.xlu2 %248 }
  0xfc   :  { %v261_v19 = vadd.f32 %v260_v20, %v259_v18  ;;  %v250_v23 = vrot.slane %v249_v22, 4 }
  0xfe   :  { %v262_v24 = vrot.slane %v261_v19, 2  ;;  %v251_v25 = vadd.f32 %v250_v23, %v249_v22 }
  0xff   :  { %s464_s18 = spop %335 }
 0x100   :  { %v263_v26 = vadd.f32 %v262_v24, %v261_v19  ;;  %v252_v27 = vrot.slane %v251_v25, 2  ;;  %s338_s19 = spop %337  ;;  %v289_v42 = vstv %s464_s18 }
 0x101   :  { %s466_s20 = spop %339  ;;  %v280_v50 = vstv %s338_s19 }
 0x102   :  { %v253_v28 = vadd.f32 %v252_v27, %v251_v25  ;;  %v264_v29 = vrot.slane %v263_v26, 1  ;;  %s342_s21 = spop %341  ;;  %v292_v44 = vstv %s466_s20 }
 0x103   :  { %v283_v38 = vstv %s342_s21 }
 0x104   :  { %v254_v30 = vrot.slane %v253_v28, 1  ;;  %v265_v32 = vadd.f32 %v264_v29, %v263_v26 }
 0x106   :  { %v255_v31 = vadd.f32 %v254_v30, %v253_v28 }
 0x108   :  { %349 = vpush %v255_v31 }
 0x109   :  { %351 = vpush %v265_v32 }
 0x10f   :  { %s469_s22 = spop %343 }
 0x110   :  { %s346_s23 = spop %345  ;;  %v295_v46 = vstv %s469_s22 }
 0x111   :  { %v286_v40 = vstv %s346_s23 }
 0x11f   :  { %s471_s24 = spop %347 }
 0x120   :  { %v298_v49 = vstv %s471_s24 }
 0x139   :  { %s350_s25 = spop %349 }
 0x13a   :  { %v271_v33 = vstv %s350_s25  ;;  %s352_s26 = spop %351 }
 0x13b   :  { %v272_v21 = vsel %vm270_vm12, %v271_v33, 0.0  ;;  %v274_v34 = vstv %s352_s26 }
 0x13c   :  { %v275_v36 = vsel %vm273_vm13, %v274_v34, %v272_v21 }
 0x13d   :  { %v278_v37 = vsel %vm276_vm14, %v277_v35, %v275_v36 }
 0x13e   :  { %v281_v39 = vsel %vm279_vm15, %v280_v50, %v278_v37 }
 0x13f   :  { %v284_v41 = vsel %vm282_vm0, %v283_v38, %v281_v39 }
 0x140   :  { %v287_v43 = vsel %vm285_vm1, %v286_v40, %v284_v41 }
 0x141   :  { %v290_v45 = vsel %vm288_vm2, %v289_v42, %v287_v43 }
 0x142   :  { %v293_v48 = vsel %vm291_vm3, %v292_v44, %v290_v45 }
 0x143   :  { %v296_v51 = vsel %vm294_vm4, %v295_v46, %v293_v48 }
 0x144   :  { %v299_v52 = vsel %vm297_vm5, %v298_v49, %v296_v51 }
 0x145   :  { %v300_v53 = vadd.f32 %v299_v52, %v267_v47 }
 0x147   :  { %302 = vst.msk [vmem:[#allocation2] sm:$0x1] %vm50_vm11, %v300_v53 }
 0x148   :  { %313 = dma.vmem_to_hbm [thread:$0]  %s309_s28, 16, %s311_s4, [#allocation3]  }
 0x149   :  { %388 = dma.done.wait [#allocation3], 16  }
 0x14a   :  { %389 = vsyncadd [#allocation3], 4294967280 }
 0x14b   :  { %318 = vsyncpa [#allocation3], 1 }

</bundles_post_ra>
